<compile_context>
chip_gen: v5e
topology: v5e:2x2
jax: 0.10.0
libtpu: 0.0.40
codegen_flags: <defaults>
</compile_context>

<pallas_src>
import functools

import jax
import jax.numpy as jnp
from jax import lax
from jax.experimental import pallas as pl
from jax.experimental.pallas import tpu as pltpu

SUPCON_TEMPERATURE = 0.1        # cancels exactly under NTXent's cosine (kept for docs)
NTXENT_TEMPERATURE = 0.07
_INV_NTXENT_T = 1.0 / NTXENT_TEMPERATURE
_EPS = 1e-12                    # torch F.normalize / CosineSimilarity eps
_TINY = 1.1754943508222875e-38  # torch.finfo(float32).tiny (negligible; folded analytically)
_NEG_BIG = -1.0e30              # additive bias: exp(sim + bias) == 0 for padded columns
_VMEM_LIMIT = 48 * 1024 * 1024  # > v5e/v6e scoped defaults, < v7x 64 MiB physical
_VMEM_BUDGET = 28 * 1024 * 1024 # budget the tile chooser gives kernel 3's big buffers


def _round_up(x, m):
    return ((x + m - 1) // m) * m


def _largest_row_tile(n):
    for c in (512, 256, 128):
        if n % c == 0:
            return c
    return n


def _choose_q_tile(bp, dp, mm_bytes, tk):
    """Largest anchor-row tile whose kernel-3 VMEM footprint fits the budget."""
    fixed = (2 * 4 * dp * dp          # G block (double-buffered)
             + 2 * mm_bytes * tk * dp  # zs_k streaming block (double-buffered)
             + 8 * 4 * bp)             # label / bias rows + 3-D label table
    for tq in (1024, 512, 256, 128):
        if bp % tq:
            continue
        need = (4 * tq * bp            # sim cache scratch
                + mm_bytes * tq * dp   # W_q scratch
                + 2 * mm_bytes * tq * dp)  # zs_q block (double-buffered)
        if fixed + need <= _VMEM_BUDGET:
            return tq
    # TODO(synk): for very large B (4*128*Bp > budget) fall back to the cache-free
    # two-phase reduction instead of over-subscribing VMEM.
    return 128


# --------------------------------------------------------------------------------------------
# Kernel 1: row-L2-normalize x and accumulate the (D,D) Gram matrix G = z^T z.
# Grid: (n_row_tiles,), "arbitrary" (G accumulates across the axis).
# --------------------------------------------------------------------------------------------
def _normalize_gram_kernel(x_ref, z_ref, g_ref):
    x = x_ref[...].astype(jnp.float32)                         # native dtype in HBM, f32 in-kernel
    sumsq = jnp.sum(x * x, axis=1, keepdims=True)
    z = x * lax.rsqrt(jnp.maximum(sumsq, _EPS * _EPS))          # == x / max(||x||, eps), EUP rsqrt
    z_ref[...] = z.astype(z_ref.dtype)

    @pl.when(pl.program_id(0) == 0)
    def _():
        g_ref[...] = jnp.zeros_like(g_ref)

    # TN contraction feeds the MXU directly, no explicit (T,Dp) transpose.
    # TODO(synk): for very large feature dims (Dp >~ 2048) G should also be tiled over D.
    # TODO(synk): on v7x the single "arbitrary" axis runs on one TC; split into two
    #             per-core partial Grams if D is large enough to matter.
    g_ref[...] += lax.dot_general(z, z, (((0,), (0,)), ((), ())),
                                  preferred_element_type=jnp.float32)


# --------------------------------------------------------------------------------------------
# Kernel 2: zs_i = z_i / max(||S~_i||, eps),  ||S~_i||^2 = z_i G z_i^T.
# Folding the row norm into zs removes every per-tile row/column rescale in kernel 3.
# Grid: (n_row_tiles,), independent rows -> "parallel" (megacore).
# --------------------------------------------------------------------------------------------
def _scale_kernel(z_ref, g_ref, zs_ref):
    z = z_ref[...].astype(jnp.float32)
    w = jnp.dot(z, g_ref[...], preferred_element_type=jnp.float32)
    sq = jnp.maximum(jnp.sum(w * z, axis=1, keepdims=True), _EPS * _EPS)
    # Padded rows: z == 0 exactly -> zs == 0 exactly (invariant kernel 3 relies on).
    zs_ref[...] = (z * lax.rsqrt(sq)).astype(zs_ref.dtype)


# --------------------------------------------------------------------------------------------
# Kernel 3: single-pass tiled NT-Xent.
# Grid: (n_q, n_k), semantics ("parallel", "arbitrary").
#   kj == 0        : prologue  -- W_q = (zs_q @ G)/0.07 into VMEM scratch, reset negsum.
#   every kj       : sim tile = W_q . zs_k^T + col_bias; cache it; accumulate masked exp-sum.
#   kj == n_k - 1  : epilogue  -- positive-pair loss from the cached sims and the full negsum.
# Outputs are per-row partial sums (reduced to the scalar loss in the wrapper).
# --------------------------------------------------------------------------------------------
def _ntxent_kernel(zq_ref, g_ref, labq_ref, zk_ref, labk_ref, kbias_ref, labk3_ref,
                   loss_ref, cnt_ref, wq_ref, negsum_ref, sim_ref,
                   *, b_actual, tq, tk, n_k):
    qi = pl.program_id(0)
    kj = pl.program_id(1)

    # ---- per-qi prologue: fused former kernel "W = Z @ G" (no HBM round trip for W) ----
    @pl.when(kj == 0)
    def _prologue():
        zq = zq_ref[...].astype(jnp.float32)
        wq = jnp.dot(zq, g_ref[...], preferred_element_type=jnp.float32)
        wq_ref[...] = (wq * _INV_NTXENT_T).astype(wq_ref.dtype)
        negsum_ref[...] = jnp.zeros_like(negsum_ref)

    # ---- streaming pass over candidate tiles -------------------------------------------
    # sim_ij = ((zs_i @ G) . zs_j) / 0.07 ; NT dot_general, bf16 operands, f32 accumulate.
    m = lax.dot_general(wq_ref[...], zk_ref[...], (((1,), (1,)), ((), ())),
                        preferred_element_type=jnp.float32)            # (tq, tk)
    sim = m + kbias_ref[...]          # additive -1e30 bias kills padded candidate columns
    sim_ref[kj] = sim                 # cache for the epilogue (no phase-1 recompute)

    # |sim| <= ~1/0.07 for real pairs, so exp() is bounded (~1.6e6): no running max needed.
    neg = labq_ref[...] != labk_ref[...]                                # (tq,1) vs (1,tk)
    negsum_ref[...] += jnp.sum(jnp.where(neg, jnp.exp(sim), 0.0),
                               axis=1, keepdims=True)

    # TODO(synk): if kernel 3 stays DMA-exposed on v5e, add pipeline_mode=pl.Buffered(3)
    #             to the zs_k BlockSpec.

    # ---- per-qi epilogue: positive-pair loss from the cached similarities ---------------
    @pl.when(kj == n_k - 1)
    def _epilogue():
        negsum = negsum_ref[...]                                        # (tq, 1)
        labq = labq_ref[...]                                            # (tq, 1)
        row = qi * tq + lax.broadcasted_iota(jnp.int32, (tq, tk), 0)

        def body(k2, acc):
            loss_acc, cnt_acc = acc
            # Clamp so padded columns (sim == -1e30) cannot create inf/NaN; real sims
            # are always >= -1/0.07 so the clamp never changes a valid value.
            sims = jnp.maximum(sim_ref[k2], -50.0)                      # (tq, tk)
            labk = labk3_ref[k2]                                        # (1, tk)
            col = k2 * tk + lax.broadcasted_iota(jnp.int32, (tq, tk), 1)
            pos = ((labq == labk) & (row != col)
                   & (row < b_actual) & (col < b_actual))
            # -log(exp(s)/(exp(s)+negsum) + TINY) == log(1 + negsum*exp(-s)) up to TINY,
            # which is ~1e-38 and never within ~1e15x of the true value (|s| <= 1/0.07).
            # Rows with no negatives have negsum == 0 -> per_pair == 0 (matches reference).
            per = jnp.where(pos, jnp.log(1.0 + negsum * jnp.exp(-sims)), 0.0)
            return (loss_acc + jnp.sum(per, axis=1, keepdims=True),
                    cnt_acc + jnp.sum(pos.astype(jnp.float32), axis=1, keepdims=True))

        loss, cnt = lax.fori_loop(
            0, n_k, body,
            (jnp.zeros((tq, 1), jnp.float32), jnp.zeros((tq, 1), jnp.float32)))
        loss_ref[...] = loss
        cnt_ref[...] = cnt   # amortized (epilogue-only); robust for arbitrary label values


# --------------------------------------------------------------------------------------------
# Wrapper
# --------------------------------------------------------------------------------------------
def supervised_contrastive_loss(feature_vectors, labels, *, matmul_dtype=jnp.bfloat16):
    """JAX/Pallas forward of SupervisedContrastiveLoss(temperature=0.1)(x, labels).

    matmul_dtype=jnp.bfloat16 (default) feeds the dominant MXU matmul with bf16
    operands (f32 accumulation) -- ~1-3% deviation of the loss value.
    matmul_dtype=jnp.float32 reproduces the torch-f32 numerics to ~1e-5.
    """
    B, D = feature_vectors.shape
    Bp = _round_up(B, 128)
    Dp = _round_up(D, 128)
    mm_bytes = jnp.dtype(matmul_dtype).itemsize

    TK = 256 if Bp % 256 == 0 else 128          # matches v6e/v7x 256^2 MXU, ok on v5e
    TQ = _choose_q_tile(Bp, Dp, mm_bytes, TK)
    T1 = _largest_row_tile(Bp)
    n_q, n_k = Bp // TQ, Bp // TK

    # Zero-pad to TPU-friendly shapes; keep the input's native dtype in HBM.
    x_p = jnp.pad(feature_vectors, ((0, Bp - B), (0, Dp - D)))
    lab = jnp.pad(jnp.reshape(labels, (-1,)).astype(jnp.int32), (0, Bp - B))
    labels_col = lab.reshape(Bp, 1)
    labels_row = lab.reshape(1, Bp)
    labels_row3 = lab.reshape(n_k, 1, TK)        # epilogue view, one slab per candidate tile
    col_ids = jnp.arange(Bp, dtype=jnp.int32)
    kbias_row = jnp.where(col_ids < B, 0.0, _NEG_BIG).astype(jnp.float32).reshape(1, Bp)

    # ---- Pallas #1: normalize + Gram -------------------------------------------------------
    z, gram = pl.pallas_call(
        _normalize_gram_kernel,
        out_shape=(jax.ShapeDtypeStruct((Bp, Dp), matmul_dtype),
                   jax.ShapeDtypeStruct((Dp, Dp), jnp.float32)),
        grid_spec=pltpu.PrefetchScalarGridSpec(
            num_scalar_prefetch=0,
            grid=(Bp // T1,),
            in_specs=[pl.BlockSpec((T1, Dp), lambda i: (i, 0))],
            out_specs=[pl.BlockSpec((T1, Dp), lambda i: (i, 0)),
                       pl.BlockSpec((Dp, Dp), lambda i: (0, 0))]),
        compiler_params=pltpu.CompilerParams(
            dimension_semantics=("arbitrary",), vmem_limit_bytes=_VMEM_LIMIT),
    )(x_p)

    # ---- Pallas #2: fold 1/||S_i|| into the rows (zs = z / ||S~_i||) -----------------------
    zs = pl.pallas_call(
        _scale_kernel,
        out_shape=jax.ShapeDtypeStruct((Bp, Dp), matmul_dtype),
        grid_spec=pltpu.PrefetchScalarGridSpec(
            num_scalar_prefetch=0,
            grid=(Bp // T1,),
            in_specs=[pl.BlockSpec((T1, Dp), lambda i: (i, 0)),
                      pl.BlockSpec((Dp, Dp), lambda i: (0, 0))],
            out_specs=pl.BlockSpec((T1, Dp), lambda i: (i, 0))),
        compiler_params=pltpu.CompilerParams(
            dimension_semantics=("parallel",), vmem_limit_bytes=_VMEM_LIMIT),
    )(z, gram)

    # ---- Pallas #3: single-pass tiled NT-Xent over the implicit (Bp, Bp) similarity --------
    loss_rows, cnt_rows = pl.pallas_call(
        functools.partial(_ntxent_kernel, b_actual=B, tq=TQ, tk=TK, n_k=n_k),
        out_shape=(jax.ShapeDtypeStruct((Bp, 1), jnp.float32),
                   jax.ShapeDtypeStruct((Bp, 1), jnp.float32)),
        grid_spec=pltpu.PrefetchScalarGridSpec(
            num_scalar_prefetch=0,
            grid=(n_q, n_k),
            in_specs=[
                pl.BlockSpec((TQ, Dp), lambda qi, kj: (qi, 0)),        # zs (anchor rows)
                pl.BlockSpec((Dp, Dp), lambda qi, kj: (0, 0)),         # G (resident)
                pl.BlockSpec((TQ, 1), lambda qi, kj: (qi, 0)),         # labels (anchor col)
                pl.BlockSpec((TK, Dp), lambda qi, kj: (kj, 0)),        # zs (candidate stream)
                pl.BlockSpec((1, TK), lambda qi, kj: (0, kj)),         # labels (candidate tile)
                pl.BlockSpec((1, TK), lambda qi, kj: (0, kj)),         # padded-column bias tile
                pl.BlockSpec((n_k, 1, TK), lambda qi, kj: (0, 0, 0)),  # labels, epilogue view
            ],
            out_specs=[pl.BlockSpec((TQ, 1), lambda qi, kj: (qi, 0)),
                       pl.BlockSpec((TQ, 1), lambda qi, kj: (qi, 0))],
            scratch_shapes=[pltpu.VMEM((TQ, Dp), matmul_dtype),        # W_q (scaled)
                            pltpu.VMEM((TQ, 1), jnp.float32),          # negsum
                            pltpu.VMEM((n_k, TQ, TK), jnp.float32)]),  # sim cache
        compiler_params=pltpu.CompilerParams(
            dimension_semantics=("parallel", "arbitrary"), vmem_limit_bytes=_VMEM_LIMIT),
    )(zs, gram, labels_col, zs, labels_row, kbias_row, labels_row3)

    total = jnp.sum(loss_rows)
    n_pos = jnp.sum(cnt_rows)
    return jnp.where(n_pos > 0, total / jnp.maximum(n_pos, 1.0), 0.0)


# --------------------------------------------------------------------------------------------
# Pure-JAX reference mirroring the PyTorch / pytorch-metric-learning math.
# --------------------------------------------------------------------------------------------
def _reference_loss(feature_vectors, labels):
    x = feature_vectors.astype(jnp.float32)
    lab = jnp.reshape(labels, (-1,))
    z = x / jnp.maximum(jnp.linalg.norm(x, axis=1, keepdims=True), _EPS)
    s = (z @ z.T) / SUPCON_TEMPERATURE
    sh = s / jnp.maximum(jnp.linalg.norm(s, axis=1, keepdims=True), _EPS)
    sim = (sh @ sh.T) / NTXENT_TEMPERATURE
    same = lab[:, None] == lab[None, :]
    eye = jnp.eye(x.shape[0], dtype=bool)
    pos = same & ~eye
    neg = ~same
    neg_sum = jnp.sum(jnp.where(neg, jnp.exp(sim), 0.0), axis=1, keepdims=True)
    per_pair = -jnp.log(jnp.exp(sim) / (jnp.exp(sim) + neg_sum) + _TINY)
    n_pos = jnp.sum(pos)
    total = jnp.sum(jnp.where(pos, per_pair, 0.0))
    return jnp.where(n_pos > 0, total / jnp.maximum(n_pos, 1), 0.0)


if __name__ == "__main__":
    key = jax.random.PRNGKey(0)
    k1, k2, k3 = jax.random.split(key, 3)

    # Nominal small shape for the module: (batch=8, embedding_dim=32), labels (8, 1).
    B, D = 8, 32
    x = jax.random.normal(k1, (B, D), dtype=jnp.float32)
    labels = jnp.array([[0], [1], [0], [1], [2], [2], [0], [1]], dtype=jnp.int32)
    ref = _reference_loss(x, labels)

    # Exact (f32) path: matches the torch-f32 reference tightly.
    loss_f32 = supervised_contrastive_loss(x, labels, matmul_dtype=jnp.float32)
    jax.block_until_ready(loss_f32)
    assert jnp.allclose(loss_f32, ref, rtol=2e-3, atol=2e-3), (loss_f32, ref)

    # Default bf16-MXU path: sanity-checked at a looser tolerance (bf16 operand
    # rounding gives ~1-3% deviation of the scalar loss; accumulations stay f32).
    loss_bf16 = supervised_contrastive_loss(x, labels)
    jax.block_until_ready(loss_bf16)
    assert jnp.allclose(loss_bf16, ref, rtol=1e-1, atol=1e-1), (loss_bf16, ref)

    # Second check exercising padding + a multi-tile grid: B=300 -> Bp=384, TQ=TK=128,
    # kernel-3 grid (3, 3) with a 3-slab sim cache and epilogue loop.
    B2, D2 = 300, 72
    x2 = jax.random.normal(k2, (B2, D2), dtype=jnp.float32)
    labels2 = jax.random.randint(k3, (B2,), 0, 6, dtype=jnp.int32)
    ref2 = _reference_loss(x2, labels2)

    loss2_f32 = supervised_contrastive_loss(x2, labels2, matmul_dtype=jnp.float32)
    jax.block_until_ready(loss2_f32)
    assert jnp.allclose(loss2_f32, ref2, rtol=2e-3, atol=2e-3), (loss2_f32, ref2)

    loss2_bf16 = supervised_contrastive_loss(x2, labels2)
    jax.block_until_ready(loss2_bf16)
    assert jnp.allclose(loss2_bf16, ref2, rtol=1e-1, atol=1e-1), (loss2_bf16, ref2)

    print("KERNEL_OK")
</pallas_src>

<mosaic_0001>
module attributes {stable_mosaic.version = 11 : i64} {
  func.func @_normalize_gram_kernel(%arg0: i32, %arg1: memref<128x128xf32, #tpu.memory_space<vmem>>, %arg2: memref<128x128xf32, #tpu.memory_space<vmem>>, %arg3: memref<128x128xf32, #tpu.memory_space<vmem>>) attributes {dimension_semantics = [#tpu.dimension_semantics<arbitrary>], iteration_bounds = array<i64: 1>, scalar_prefetch = 0 : i64, scratch_operands = 0 : i64, tpu.core_type = #tpu.core_type<tc>, window_params = [{transform_indices = @transform_0, window_bounds = array<i64: 128, 128>}, {transform_indices = @transform_1, window_bounds = array<i64: 128, 128>}, {pipeline_mode = #tpu.pipeline_mode<synchronous>, transform_indices = @transform_2, window_bounds = array<i64: 128, 128>}]} {
    %c0 = arith.constant 0 : index
    %c0_0 = arith.constant 0 : index
    %0 = vector.load %arg1[%c0, %c0_0] : memref<128x128xf32, #tpu.memory_space<vmem>>, vector<128x128xf32>
    %1 = arith.mulf %0, %0 : vector<128x128xf32>
    %cst = arith.constant dense<0.000000e+00> : vector<128xf32>
    %2 = vector.multi_reduction <add>, %1, %cst [1] : vector<128x128xf32> to vector<128xf32>
    %3 = vector.shape_cast %2 : vector<128xf32> to vector<128x1xf32>
    %cst_1 = arith.constant 1.000000e-24 : f32
    %4 = vector.broadcast %cst_1 : f32 to vector<128x1xf32>
    %5 = arith.maximumf %3, %4 : vector<128x1xf32>
    %6 = math.rsqrt %5 : vector<128x1xf32>
    %7 = vector.broadcast %6 : vector<128x1xf32> to vector<128x128xf32>
    %8 = arith.mulf %0, %7 : vector<128x128xf32>
    %c0_2 = arith.constant 0 : index
    %c0_3 = arith.constant 0 : index
    %9 = vector.load %arg2[%c0_2, %c0_3] : memref<128x128xf32, #tpu.memory_space<vmem>>, vector<128x128xf32>
    tpu.vector_store %arg2[%c0_2, %c0_3], %8 {strides = array<i32>} : memref<128x128xf32, #tpu.memory_space<vmem>>, vector<128x128xf32>,
    %c0_i32 = arith.constant 0 : i32
    %10 = arith.cmpi eq, %arg0, %c0_i32 : i32
    %11 = arith.extui %10 : i1 to i32
    %c0_i32_4 = arith.constant 0 : i32
    %12 = arith.cmpi ne, %11, %c0_i32_4 : i32
    scf.if %12 {
      %cst_10 = arith.constant 0.000000e+00 : f32
      %17 = vector.broadcast %cst_10 : f32 to vector<128x128xf32>
      %c0_11 = arith.constant 0 : index
      %c0_12 = arith.constant 0 : index
      %18 = vector.load %arg3[%c0_11, %c0_12] : memref<128x128xf32, #tpu.memory_space<vmem>>, vector<128x128xf32>
      tpu.vector_store %arg3[%c0_11, %c0_12], %17 {strides = array<i32>} : memref<128x128xf32, #tpu.memory_space<vmem>>, vector<128x128xf32>,
    } else {
    }
    %c0_5 = arith.constant 0 : index
    %c0_6 = arith.constant 0 : index
    %13 = vector.load %arg3[%c0_5, %c0_6] : memref<128x128xf32, #tpu.memory_space<vmem>>, vector<128x128xf32>
    %cst_7 = arith.constant dense<0.000000e+00> : vector<128x128xf32>
    %14 = tpu.matmul %8, %8, %cst_7 {dimension_numbers = #tpu.dot_dimension_numbers<[0], [0], [1], [1], [0, 1, 1, 1], [], []>} : vector<128x128xf32>, vector<128x128xf32>, vector<128x128xf32> -> vector<128x128xf32>
    %15 = arith.addf %13, %14 : vector<128x128xf32>
    %c0_8 = arith.constant 0 : index
    %c0_9 = arith.constant 0 : index
    %16 = vector.load %arg3[%c0_8, %c0_9] : memref<128x128xf32, #tpu.memory_space<vmem>>, vector<128x128xf32>
    tpu.vector_store %arg3[%c0_8, %c0_9], %15 {strides = array<i32>} : memref<128x128xf32, #tpu.memory_space<vmem>>, vector<128x128xf32>,
    return
  }
  func.func @transform_0(%arg0: i32) -> (i32, i32) {
    %c0_i32 = arith.constant 0 : i32
    %c0_i32_0 = arith.constant 0 : i32
    return %arg0, %c0_i32 : i32, i32
  }
  func.func @transform_1(%arg0: i32) -> (i32, i32) {
    %c0_i32 = arith.constant 0 : i32
    %c0_i32_0 = arith.constant 0 : i32
    return %arg0, %c0_i32 : i32, i32
  }
  func.func @transform_2(%arg0: i32) -> (i32, i32) {
    %c0_i32 = arith.constant 0 : i32
    %c0_i32_0 = arith.constant 0 : i32
    %c0_i32_1 = arith.constant 0 : i32
    return %c0_i32, %c0_i32_0 : i32, i32
  }
}

</mosaic_0001>

<bundles_post_ra>
// kernel: tpu_custom_call.1
= control target key start
LH: loop header
LB: loop body
LE: loop exit
PB: predicated region body
PF: predicated region fallthrough
CT: control target
= control target key end

     0   :  { %8 = vsyncpa [#allocation3], 0  ;;  %s1156_s0 = inlined_call_operand.hbm [shape: f32[128,128], index: 0, kind: input, shape index: {}]   ;;  %s1157_s1 = inlined_call_operand.hbm [shape: f32[128,128], index: 1, kind: output, shape index: {0}]   ;;  %s1158_s2 = inlined_call_operand.hbm [shape: f32[128,128], index: 2, kind: output, shape index: {1}]  }
   0x1   :  { %9 = vsyncpa [#allocation4], 0 }
   0x2   :  { %10 = vsyncpa [#allocation7], 0  ;;  %s15_s11 = sshll.u32 %s1156_s0, 4  ;;  %s666_s12 = smov [#allocation2]   ;;  %s16_s11 = int_to_ptr.hbm [resolvable:$true] %s15_s11 }
   0x3   :  { %s17_s13 = sshll.u32 %s666_s12, 4  ;;  %s667_s14 = smov 128   ;;  %s18_s13 = int_to_ptr.vmem [resolvable:$true] %s17_s13 }
   0x4   :  { %s668_s15 = smov 8  }
   0x5   :  { %23 = dma.hbm_to_vmem [thread:$0]  %s16_s11, 2048, %s18_s13, [#allocation3], %s667_s14, %s667_s14, %s668_s15  }
   0x6   :  { %660 = dma.done.wait [#allocation3], 2048  }
   0x7   :  { %661 = vsyncadd [#allocation3], 4294965248  ;;  %v692_v0 = vld [vmem:[#allocation2] sm:$0xff]  ;;  %v694_v1 = vld [vmem:[#allocation2 + $0x10] sm:$0xff]  ;;  %s471_s17 = sshll.u32 %s1157_s1, 4  ;;  %s669_s18 = smov [#allocation5]   ;;  %s472_s17 = int_to_ptr.hbm [resolvable:$true] %s471_s17 }
   0x8   :  { %v44_v2 = vmul.f32 %v692_v0, %v692_v0  ;;  %v46_v3 = vmul.f32 %v694_v1, %v694_v1  ;;  %v700_v4 = vld [vmem:[#allocation2 + $0x20] sm:$0xff]  ;;  %v704_v6 = vld [vmem:[#allocation2 + $0x8] sm:$0xff]  ;;  %v706_v7 = vld [vmem:[#allocation2 + $0x18] sm:$0xff]  ;;  %s469_s19 = sshll.u32 %s669_s18, 4  ;;  %s670_s1 = smov [#allocation6]   ;;  %s470_s19 = int_to_ptr.vmem [resolvable:$true] %s469_s19 }
   0x9   :  { %v48_v5 = vmul.f32 %v700_v4, %v700_v4  ;;  %v708_v8 = vld [vmem:[#allocation2 + $0x28] sm:$0xff]  ;;  %v45_v9 = vmul.f32 %v704_v6, %v704_v6  ;;  %v47_v10 = vmul.f32 %v706_v7, %v706_v7  ;;  %v716_v12 = vld [vmem:[#allocation2 + $0x30] sm:$0xff]  ;;  %v718_v13 = vld [vmem:[#allocation2 + $0x38] sm:$0xff]  ;;  %s482_s20 = sshll.u32 %s670_s1, 4  ;;  %s484_s23 = sshll.u32 %s1158_s2, 4  ;;  %s483_s20 = int_to_ptr.vmem [resolvable:$true] %s482_s20  ;;  %s485_s23 = int_to_ptr.hbm [resolvable:$true] %s484_s23 }
   0xa   :  { %60 = vadd.xlane.f32.xlu0 %v44_v2  ;;  %64 = vadd.xlane.f32.xlu1 %v46_v3  ;;  %v49_v11 = vmul.f32 %v708_v8, %v708_v8  ;;  %v720_v14 = vld [vmem:[#allocation2 + $0x40] sm:$0xff]  ;;  %v50_v15 = vmul.f32 %v716_v12, %v716_v12  ;;  %v51_v16 = vmul.f32 %v718_v13, %v718_v13  ;;  %v728_v18 = vld [vmem:[#allocation2 + $0x48] sm:$0xff]  ;;  %v730_v19 = vld [vmem:[#allocation2 + $0x50] sm:$0xff] }
   0xb   :  { %68 = vadd.xlane.f32.xlu2 %v48_v5  ;;  %v52_v17 = vmul.f32 %v720_v14, %v720_v14  ;;  %v732_v20 = vld [vmem:[#allocation2 + $0x58] sm:$0xff]  ;;  %v53_v21 = vmul.f32 %v728_v18, %v728_v18  ;;  %v54_v22 = vmul.f32 %v730_v19, %v730_v19  ;;  %v740_v24 = vld [vmem:[#allocation2 + $0x60] sm:$0xff]  ;;  %v742_v25 = vld [vmem:[#allocation2 + $0x68] sm:$0xff] }
   0xc   :  { %v55_v23 = vmul.f32 %v732_v20, %v732_v20  ;;  %v744_v26 = vld [vmem:[#allocation2 + $0x70] sm:$0xff]  ;;  %v56_v27 = vmul.f32 %v740_v24, %v740_v24  ;;  %v57_v28 = vmul.f32 %v742_v25, %v742_v25  ;;  %v752_v30 = vld [vmem:[#allocation2 + $0x78] sm:$0xff] }
   0xd   :  { %v58_v29 = vmul.f32 %v744_v26, %v744_v26  ;;  %v59_v31 = vmul.f32 %v752_v30, %v752_v30 }
  0x12   :  { %62 = vadd.xlane.f32.xlu0 %v45_v9  ;;  %66 = vadd.xlane.f32.xlu1 %v47_v10 }
  0x13   :  { %70 = vadd.xlane.f32.xlu2 %v49_v11 }
  0x1a   :  { %72 = vadd.xlane.f32.xlu0 %v50_v15  ;;  %74 = vadd.xlane.f32.xlu1 %v51_v16 }
  0x1b   :  { %76 = vadd.xlane.f32.xlu2 %v52_v17 }
  0x22   :  { %78 = vadd.xlane.f32.xlu0 %v53_v21  ;;  %80 = vadd.xlane.f32.xlu1 %v54_v22 }
  0x23   :  { %82 = vadd.xlane.f32.xlu2 %v55_v23 }
  0x2a   :  { %84 = vadd.xlane.f32.xlu0 %v56_v27  ;;  %86 = vadd.xlane.f32.xlu1 %v57_v28 }
  0x2b   :  { %88 = vadd.xlane.f32.xlu2 %v58_v29 }
  0x32   :  { %90 = vadd.xlane.f32.xlu0 %v59_v31 }
  0x7d   :  { %v61_v32 = vpop.xlane.xlu0 %60  ;;  %v65_v33 = vpop.xlane.xlu1 %64 }
  0x7e   :  { %v92_v34 = vmax.f32 %v61_v32, 1e-24  ;;  %v94_v35 = vmax.f32 %v65_v33, 1e-24  ;;  %v69_v36 = vpop.xlane.xlu2 %68 }
  0x7f   :  { %v96_v37 = vmax.f32 %v69_v36, 1e-24 }
  0x80   :  { %556 = vrsqrt.f32 %v92_v34  ;;  %vm114_vm1 = vweird.f32 %v92_v34  ;;  %vm134_vm2 = vweird.f32 %v94_v35 }
  0x81   :  { %558 = vrsqrt.f32 %v94_v35  ;;  %vm154_vm4 = vweird.f32 %v96_v37 }
  0x82   :  { %560 = vrsqrt.f32 %v96_v37 }
  0x85   :  { %v63_v38 = vpop.xlane.xlu0 %62  ;;  %v67_v39 = vpop.xlane.xlu1 %66 }
  0x86   :  { %v557_v40 = vpop.eup %556  ;;  %v756_v41 = vmax.f32 %v63_v38, 1e-24  ;;  %v758_v42 = vmax.f32 %v67_v39, 1e-24  ;;  %v71_v43 = vpop.xlane.xlu2 %70 }
  0x87   :  { %v559_v44 = vpop.eup %558  ;;  %v109_v45 = vmul.f32 %v557_v40, %v92_v34  ;;  %v760_v46 = vmax.f32 %v71_v43, 1e-24  ;;  %vm115_vm0 = vweird.f32 %v557_v40 }
  0x88   :  { %v561_v47 = vpop.eup %560  ;;  %v129_v48 = vmul.f32 %v559_v44, %v94_v35  ;;  %562 = vrsqrt.f32 %v756_v41  ;;  %vm135_vm3 = vweird.f32 %v559_v44  ;;  %vm767_vm6 = vmor %vm114_vm1, %vm115_vm0  ;;  %vm144_vm8 = vweird.f32 %v758_v42 }
  0x89   :  { %v110_v49 = vmul.f32 %v557_v40, %v109_v45  ;;  %564 = vrsqrt.f32 %v758_v42  ;;  %v149_v50 = vmul.f32 %v561_v47, %v96_v37  ;;  %vm155_vm5 = vweird.f32 %v561_v47  ;;  %vm776_vm7 = vmor %vm134_vm2, %vm135_vm3 }
  0x8a   :  { %v130_v51 = vmul.f32 %v559_v44, %v129_v48  ;;  %566 = vrsqrt.f32 %v760_v46  ;;  %vm789_vm9 = vmor %vm154_vm4, %vm155_vm5  ;;  %vm164_vm10 = vweird.f32 %v760_v46  ;;  %vm124_vm14 = vweird.f32 %v756_v41 }
  0x8b   :  { %v111_v52 = vmul.f32 0.5, %v110_v49  ;;  %v150_v53 = vmul.f32 %v561_v47, %v149_v50 }
  0x8c   :  { %v131_v54 = vmul.f32 0.5, %v130_v51 }
  0x8d   :  { %v112_v55 = vsub.f32 1.5, %v111_v52  ;;  %v151_v56 = vmul.f32 0.5, %v150_v53  ;;  %v73_v57 = vpop.xlane.xlu0 %72  ;;  %v75_v58 = vpop.xlane.xlu1 %74 }
  0x8e   :  { %v765_v59 = vpop.eup %562  ;;  %v132_v61 = vsub.f32 1.5, %v131_v54  ;;  %v771_v62 = vmax.f32 %v73_v57, 1e-24  ;;  %v77_v63 = vpop.xlane.xlu2 %76  ;;  %v798_v27 = vmax.f32 %v75_v58, 1e-24 }
  0x8f   :  { %v773_v2 = vpop.eup %564  ;;  %v113_v3 = vmul.f32 %v557_v40, %v112_v55  ;;  %v119_v9 = vmul.f32 %v765_v59, %v756_v41  ;;  %v152_v10 = vsub.f32 1.5, %v151_v56  ;;  %v820_v38 = vmax.f32 %v77_v63, 1e-24 }
  0x90   :  { %v783_v11 = vpop.eup %566  ;;  %v133_v15 = vmul.f32 %v559_v44, %v132_v61  ;;  %v139_v16 = vmul.f32 %v773_v2, %v758_v42  ;;  %568 = vrsqrt.f32 %v771_v62  ;;  %vm145_vm11 = vweird.f32 %v773_v2 }
  0x91   :  { %v117_v21 = vsel %vm767_vm6, %v557_v40, %v113_v3  ;;  %v120_v22 = vmul.f32 %v765_v59, %v119_v9  ;;  %v153_v23 = vmul.f32 %v561_v47, %v152_v10  ;;  %v159_v32 = vmul.f32 %v783_v11, %v760_v46  ;;  %vm838_vm15 = vmor %vm144_vm8, %vm145_vm11 }
  0x92   :  { %v801_v28 = vmul.f32 %v117_v21, %v692_v0  ;;  %v137_v29 = vsel %vm776_vm7, %v559_v44, %v133_v15  ;;  %v140_v31 = vmul.f32 %v773_v2, %v139_v16  ;;  %vm125_vm12 = vweird.f32 %v765_v59 }
  0x93   :  { %v809_v33 = vmul.f32 %v137_v29, %v694_v1  ;;  %v121_v34 = vmul.f32 0.5, %v120_v22  ;;  %v157_v35 = vsel %vm789_vm9, %v561_v47, %v153_v23  ;;  %v160_v37 = vmul.f32 %v783_v11, %v159_v32  ;;  %vm126_vm0 = vmor %vm124_vm14, %vm125_vm12 }
  0x94   :  { %284 = vst [vmem:[#allocation5] sm:$0xff] %v801_v28  ;;  %v141_v0 = vmul.f32 0.5, %v140_v31  ;;  %v816_v36 = vmul.f32 %v157_v35, %v700_v4  ;;  %336 = vxpose.xlu1.b32.start [1/16] %v801_v28, 128  ;;  %vm165_vm13 = vweird.f32 %v783_v11  ;;  %570 = vrsqrt.f32 %v798_v27 }
  0x95   :  { %286 = vst [vmem:[#allocation5 + $0x10] sm:$0xff] %v809_v33  ;;  %v122_v1 = vsub.f32 1.5, %v121_v34  ;;  %v79_v39 = vpop.xlane.xlu0 %78  ;;  %v81_v40 = vpop.xlane.xlu1 %80  ;;  %v161_v44 = vmul.f32 0.5, %v160_v37  ;;  %572 = vrsqrt.f32 %v820_v38  ;;  %vm854_vm1 = vmor %vm164_vm10, %vm165_vm13  ;;  %vm174_vm2 = vweird.f32 %v771_v62 }
  0x96   :  { %v826_v43 = vpop.eup %568  ;;  %v142_v4 = vsub.f32 1.5, %v141_v0  ;;  %288 = vst [vmem:[#allocation5 + $0x20] sm:$0xff] %v816_v36  ;;  %v829_v45 = vmax.f32 %v79_v39, 1e-24  ;;  %v83_v47 = vpop.xlane.xlu2 %82  ;;  %v860_v55 = vmax.f32 %v81_v40, 1e-24  ;;  %vm184_vm4 = vweird.f32 %v798_v27 }
  0x97   :  { %v123_v48 = vmul.f32 %v765_v59, %v122_v1  ;;  %v169_v50 = vmul.f32 %v826_v43, %v771_v62  ;;  %v162_v52 = vsub.f32 1.5, %v161_v44  ;;  %v858_v54 = vmax.f32 %v83_v47, 1e-24 }
  0x98   :  { %v143_v51 = vmul.f32 %v773_v2, %v142_v4  ;;  %574 = vrsqrt.f32 %v829_v45  ;;  %vm175_vm3 = vweird.f32 %v826_v43  ;;  %vm194_vm6 = vweird.f32 %v820_v38 }
  0x99   :  { %v127_v41 = vsel %vm126_vm0, %v765_v59, %v123_v48  ;;  %v170_v53 = vmul.f32 %v826_v43, %v169_v50  ;;  %v163_v58 = vmul.f32 %v783_v11, %v162_v52  ;;  %576 = vrsqrt.f32 %v858_v54  ;;  %vm900_vm5 = vmor %vm174_vm2, %vm175_vm3 }
  0x9a   :  { %v863_v56 = vmul.f32 %v127_v41, %v704_v6  ;;  %v147_v57 = vsel %vm838_vm15, %v773_v2, %v143_v51  ;;  %v870_v46 = vpop.eup %570  ;;  %578 = vrsqrt.f32 %v860_v55  ;;  %vm204_vm9 = vweird.f32 %v829_v45 }
  0x9b   :  { %v873_v59 = vmul.f32 %v147_v57, %v706_v7  ;;  %v171_v60 = vmul.f32 0.5, %v170_v53  ;;  %v877_v6 = vpop.eup %572  ;;  %v167_v61 = vsel %vm854_vm1, %v783_v11, %v163_v58  ;;  %v179_v63 = vmul.f32 %v870_v46, %v798_v27 }
  0x9c   :  { %285 = vst [vmem:[#allocation5 + $0x8] sm:$0xff] %v863_v56  ;;  %337 = vxpose.xlu1.b32.cont [2/16] %v863_v56, 128  ;;  %v889_v2 = vmul.f32 %v167_v61, %v708_v8  ;;  %v189_v3 = vmul.f32 %v877_v6, %v820_v38  ;;  %vm185_vm7 = vweird.f32 %v870_v46  ;;  %vm195_vm8 = vweird.f32 %v877_v6 }
  0x9d   :  { %287 = vst [vmem:[#allocation5 + $0x18] sm:$0xff] %v873_v59  ;;  %v172_v7 = vsub.f32 1.5, %v171_v60  ;;  %v85_v5 = vpop.xlane.xlu0 %84  ;;  %v87_v9 = vpop.xlane.xlu1 %86  ;;  %v180_v8 = vmul.f32 %v870_v46, %v179_v63  ;;  %vm940_vm11 = vmor %vm184_vm4, %vm185_vm7  ;;  %vm224_vm13 = vweird.f32 %v858_v54  ;;  %vm214_vm14 = vweird.f32 %v860_v55 }
  0x9e   :  { %v894_v10 = vpop.eup %574  ;;  %v906_v15 = vmax.f32 %v85_v5, 1e-24  ;;  %v89_v16 = vpop.xlane.xlu2 %88  ;;  %v908_v17 = vmax.f32 %v87_v9, 1e-24  ;;  %289 = vst [vmem:[#allocation5 + $0x28] sm:$0xff] %v889_v2  ;;  %v190_v22 = vmul.f32 %v877_v6, %v189_v3  ;;  %vm951_vm12 = vmor %vm194_vm6, %vm195_vm8 }
  0x9f   :  { %v173_v21 = vmul.f32 %v826_v43, %v172_v7  ;;  %v199_v62 = vmul.f32 %v894_v10, %v829_v45  ;;  %v181_v23 = vmul.f32 0.5, %v180_v8  ;;  %v918_v29 = vmax.f32 %v89_v16, 1e-24  ;;  %v920_v31 = vpop.eup %576 }
  0xa0   :  { %580 = vrsqrt.f32 %v906_v15  ;;  %v191_v35 = vmul.f32 0.5, %v190_v22  ;;  %v927_v0 = vpop.eup %578  ;;  %v219_v39 = vmul.f32 %v920_v31, %v858_v54  ;;  %vm205_vm10 = vweird.f32 %v894_v10 }
  0xa1   :  { %v177_v32 = vsel %vm900_vm5, %v826_v43, %v173_v21  ;;  %v200_v34 = vmul.f32 %v894_v10, %v199_v62  ;;  %582 = vrsqrt.f32 %v908_v17  ;;  %v182_v1 = vsub.f32 1.5, %v181_v23  ;;  %vm967_vm15 = vmor %vm204_vm9, %vm205_vm10 }
  0xa2   :  { %v930_v37 = vmul.f32 %v177_v32, %v716_v12  ;;  %v192_v43 = vsub.f32 1.5, %v191_v35  ;;  %v209_v12 = vmul.f32 %v927_v0, %v860_v55  ;;  %v220_v27 = vmul.f32 %v920_v31, %v219_v39 }
  0xa3   :  { %v201_v40 = vmul.f32 0.5, %v200_v34  ;;  %v183_v47 = vmul.f32 %v870_v46, %v182_v1  ;;  %584 = vrsqrt.f32 %v918_v29  ;;  %vm225_vm0 = vweird.f32 %v920_v31 }
  0xa4   :  { %290 = vst [vmem:[#allocation5 + $0x30] sm:$0xff] %v930_v37  ;;  %338 = vxpose.xlu1.b32.cont [3/16] %v809_v33, 128  ;;  %v193_v49 = vmul.f32 %v877_v6, %v192_v43  ;;  %v210_v50 = vmul.f32 %v927_v0, %v209_v12  ;;  %v221_v53 = vmul.f32 0.5, %v220_v27  ;;  %vm215_vm1 = vweird.f32 %v927_v0  ;;  %vm997_vm2 = vmor %vm224_vm13, %vm225_vm0 }
  0xa5   :  { %v202_v48 = vsub.f32 1.5, %v201_v40  ;;  %v91_v38 = vpop.xlane.xlu0 %90  ;;  %v187_v41 = vsel %vm940_vm11, %v870_v46, %v183_v47  ;;  %vm234_vm3 = vweird.f32 %v906_v15  ;;  %vm1014_vm5 = vmor %vm214_vm14, %vm215_vm1  ;;  %vm254_vm6 = vweird.f32 %v918_v29 }
  0xa6   :  { %v581_v51 = vpop.eup %580  ;;  %v975_v42 = vmax.f32 %v91_v38, 1e-24  ;;  %v197_v45 = vsel %vm951_vm12, %v877_v6, %v193_v49  ;;  %v984_v60 = vmul.f32 %v187_v41, %v718_v13  ;;  %v222_v63 = vsub.f32 1.5, %v221_v53 }
  0xa7   :  { %v977_v57 = vpop.eup %582  ;;  %v203_v58 = vmul.f32 %v894_v10, %v202_v48  ;;  %v229_v61 = vmul.f32 %v581_v51, %v906_v15  ;;  %v988_v46 = vmul.f32 %v197_v45, %v720_v14  ;;  %v211_v7 = vmul.f32 0.5, %v210_v50 }
  0xa8   :  { %291 = vst [vmem:[#allocation5 + $0x38] sm:$0xff] %v984_v60  ;;  %586 = vrsqrt.f32 %v975_v42  ;;  %v223_v9 = vmul.f32 %v920_v31, %v222_v63  ;;  %v239_v11 = vmul.f32 %v977_v57, %v908_v17  ;;  %vm235_vm4 = vweird.f32 %v581_v51 }
  0xa9   :  { %v207_v3 = vsel %vm967_vm15, %v894_v10, %v203_v58  ;;  %v230_v5 = vmul.f32 %v581_v51, %v229_v61  ;;  %v585_v14 = vpop.eup %584  ;;  %292 = vst [vmem:[#allocation5 + $0x40] sm:$0xff] %v988_v46  ;;  %v212_v10 = vsub.f32 1.5, %v211_v7  ;;  %vm1030_vm7 = vmor %vm234_vm3, %vm235_vm4  ;;  %vm244_vm8 = vweird.f32 %v908_v17 }
  0xaa   :  { %v1003_v6 = vmul.f32 %v207_v3, %v728_v18  ;;  %v249_v18 = vmul.f32 %v585_v14, %v918_v29  ;;  %v227_v16 = vsel %vm997_vm2, %v920_v31, %v223_v9  ;;  %v240_v15 = vmul.f32 %v977_v57, %v239_v11 }
  0xab   :  { %v231_v8 = vmul.f32 0.5, %v230_v5  ;;  %v213_v21 = vmul.f32 %v927_v0, %v212_v10  ;;  %v1027_v55 = vmul.f32 %v227_v16, %v732_v20  ;;  %vm245_vm9 = vweird.f32 %v977_v57 }
  0xac   :  { %293 = vst [vmem:[#allocation5 + $0x48] sm:$0xff] %v1003_v6  ;;  %339 = vxpose.xlu1.b32.cont [4/16] %v873_v59, 128  ;;  %v250_v22 = vmul.f32 %v585_v14, %v249_v18  ;;  %v241_v32 = vmul.f32 0.5, %v240_v15  ;;  %vm255_vm10 = vweird.f32 %v585_v14  ;;  %vm246_vm11 = vmor %vm244_vm8, %vm245_vm9  ;;  %vm264_vm13 = vweird.f32 %v975_v42 }
  0xad   :  { %v232_v62 = vsub.f32 1.5, %v231_v8  ;;  %v217_v31 = vsel %vm1014_vm5, %v927_v0, %v213_v21  ;;  %295 = vst [vmem:[#allocation5 + $0x58] sm:$0xff] %v1027_v55  ;;  %vm256_vm12 = vmor %vm254_vm6, %vm255_vm10 }
  0xae   :  { %v587_v34 = vpop.eup %586  ;;  %v1041_v20 = vmul.f32 %v217_v31, %v730_v19  ;;  %v251_v1 = vmul.f32 0.5, %v250_v22  ;;  %v242_v40 = vsub.f32 1.5, %v241_v32 }
  0xaf   :  { %v233_v35 = vmul.f32 %v581_v51, %v232_v62  ;;  %v259_v39 = vmul.f32 %v587_v34, %v975_v42  ;;  %vm265_vm14 = vweird.f32 %v587_v34 }
  0xb0   :  { %294 = vst [vmem:[#allocation5 + $0x50] sm:$0xff] %v1041_v20  ;;  %v252_v17 = vsub.f32 1.5, %v251_v1  ;;  %v243_v19 = vmul.f32 %v977_v57, %v242_v40  ;;  %vm266_vm15 = vmor %vm264_vm13, %vm265_vm14 }
  0xb1   :  { %v237_v0 = vsel %vm1030_vm7, %v581_v51, %v233_v35  ;;  %v260_v4 = vmul.f32 %v587_v34, %v259_v39 }
  0xb2   :  { %v1048_v43 = vmul.f32 %v237_v0, %v740_v24  ;;  %v253_v12 = vmul.f32 %v585_v14, %v252_v17  ;;  %v247_v47 = vsel %vm246_vm11, %v977_v57, %v243_v19 }
  0xb3   :  { %v261_v44 = vmul.f32 0.5, %v260_v4  ;;  %v1058_v24 = vmul.f32 %v247_v47, %v742_v25 }
  0xb4   :  { %296 = vst [vmem:[#allocation5 + $0x60] sm:$0xff] %v1048_v43  ;;  %340 = vxpose.xlu1.b32.cont [5/16] %v816_v36, 128  ;;  %v257_v27 = vsel %vm256_vm12, %v585_v14, %v253_v12 }
  0xb5   :  { %v262_v48 = vsub.f32 1.5, %v261_v44  ;;  %v1061_v29 = vmul.f32 %v257_v27, %v744_v26  ;;  %297 = vst [vmem:[#allocation5 + $0x68] sm:$0xff] %v1058_v24 }
  0xb7   :  { %v263_v49 = vmul.f32 %v587_v34, %v262_v48  ;;  %298 = vst [vmem:[#allocation5 + $0x70] sm:$0xff] %v1061_v29 }
  0xb9   :  { %v267_v50 = vsel %vm266_vm15, %v587_v34, %v263_v49 }
  0xba   :  { %v1066_v38 = vmul.f32 %v267_v50, %v752_v30 }
  0xbc   :  { %341 = vxpose.xlu1.b32.cont [6/16] %v889_v2, 128  ;;  %299 = vst [vmem:[#allocation5 + $0x78] sm:$0xff] %v1066_v38  ;;  %368 = vmatpush.msra.mxu0 %v1066_v38 }
  0xbd   :  { %502 = vmatpush.msra.mxu1 %v1066_v38  ;;  %503 = vmatpush.msra.mxu2 %v1066_v38  ;;  %477 = dma.vmem_to_hbm [thread:$0]  %s470_s19, 2048, %s472_s17, [#allocation4], %s667_s14, %s667_s14, %s668_s15  }
  0xbe   :  { %504 = vmatpush.msra.mxu3 %v1066_v38  ;;  %369 = vmatpush.msra.mxu0 %v1061_v29 }
  0xbf   :  { %505 = vmatpush.msra.mxu1 %v1061_v29  ;;  %506 = vmatpush.msra.mxu2 %v1061_v29 }
  0xc0   :  { %507 = vmatpush.msra.mxu3 %v1061_v29  ;;  %370 = vmatpush.msra.mxu0 %v1058_v24 }
  0xc1   :  { %508 = vmatpush.msra.mxu1 %v1058_v24  ;;  %509 = vmatpush.msra.mxu2 %v1058_v24 }
  0xc2   :  { %510 = vmatpush.msra.mxu3 %v1058_v24  ;;  %371 = vmatpush.msra.mxu0 %v1048_v43 }
  0xc3   :  { %511 = vmatpush.msra.mxu1 %v1048_v43  ;;  %512 = vmatpush.msra.mxu2 %v1048_v43 }
  0xc4   :  { %513 = vmatpush.msra.mxu3 %v1048_v43  ;;  %342 = vxpose.xlu1.b32.cont [7/16] %v930_v37, 128 }
  0xc5   :  { %372 = vmatpush.msra.mxu0 %v1027_v55  ;;  %514 = vmatpush.msra.mxu1 %v1027_v55 }
  0xc6   :  { %515 = vmatpush.msra.mxu2 %v1027_v55  ;;  %516 = vmatpush.msra.mxu3 %v1027_v55 }
  0xc7   :  { %373 = vmatpush.msra.mxu0 %v1041_v20  ;;  %517 = vmatpush.msra.mxu1 %v1041_v20 }
  0xc8   :  { %518 = vmatpush.msra.mxu2 %v1041_v20  ;;  %519 = vmatpush.msra.mxu3 %v1041_v20 }
  0xc9   :  { %374 = vmatpush.msra.mxu0 %v1003_v6  ;;  %520 = vmatpush.msra.mxu1 %v1003_v6 }
  0xca   :  { %521 = vmatpush.msra.mxu2 %v1003_v6  ;;  %522 = vmatpush.msra.mxu3 %v1003_v6 }
  0xcb   :  { %375 = vmatpush.msra.mxu0 %v988_v46  ;;  %523 = vmatpush.msra.mxu1 %v988_v46 }
  0xcc   :  { %524 = vmatpush.msra.mxu2 %v988_v46  ;;  %525 = vmatpush.msra.mxu3 %v988_v46 }
  0xcd   :  { %343 = vxpose.xlu1.b32.cont [8/16] %v984_v60, 128  ;;  %376 = vmatpush.msra.mxu0 %v984_v60 }
  0xce   :  { %526 = vmatpush.msra.mxu1 %v984_v60  ;;  %527 = vmatpush.msra.mxu2 %v984_v60 }
  0xcf   :  { %528 = vmatpush.msra.mxu3 %v984_v60  ;;  %377 = vmatpush.msra.mxu0 %v930_v37 }
  0xd0   :  { %529 = vmatpush.msra.mxu1 %v930_v37  ;;  %530 = vmatpush.msra.mxu2 %v930_v37 }
  0xd1   :  { %531 = vmatpush.msra.mxu3 %v930_v37  ;;  %378 = vmatpush.msra.mxu0 %v889_v2 }
  0xd2   :  { %532 = vmatpush.msra.mxu1 %v889_v2  ;;  %533 = vmatpush.msra.mxu2 %v889_v2 }
  0xd3   :  { %534 = vmatpush.msra.mxu3 %v889_v2  ;;  %379 = vmatpush.msra.mxu0 %v816_v36 }
  0xd4   :  { %535 = vmatpush.msra.mxu1 %v816_v36  ;;  %536 = vmatpush.msra.mxu2 %v816_v36 }
  0xd5   :  { %537 = vmatpush.msra.mxu3 %v816_v36  ;;  %344 = vxpose.xlu1.b32.cont [9/16] %v988_v46, 128 }
  0xd6   :  { %380 = vmatpush.msra.mxu0 %v873_v59  ;;  %538 = vmatpush.msra.mxu1 %v873_v59 }
  0xd7   :  { %539 = vmatpush.msra.mxu2 %v873_v59  ;;  %540 = vmatpush.msra.mxu3 %v873_v59 }
  0xd8   :  { %381 = vmatpush.msra.mxu0 %v809_v33  ;;  %541 = vmatpush.msra.mxu1 %v809_v33 }
  0xd9   :  { %542 = vmatpush.msra.mxu2 %v809_v33  ;;  %543 = vmatpush.msra.mxu3 %v809_v33 }
  0xda   :  { %382 = vmatpush.msra.mxu0 %v863_v56  ;;  %544 = vmatpush.msra.mxu1 %v863_v56 }
  0xdb   :  { %545 = vmatpush.msra.mxu2 %v863_v56  ;;  %546 = vmatpush.msra.mxu3 %v863_v56 }
  0xdc   :  { %383 = vmatpush.msra.mxu0 %v801_v28  ;;  %547 = vmatpush.msra.mxu1 %v801_v28 }
  0xdd   :  { %548 = vmatpush.msra.mxu2 %v801_v28  ;;  %549 = vmatpush.msra.mxu3 %v801_v28 }
  0xde   :  { %345 = vxpose.xlu1.b32.cont [10/16] %v1003_v6, 128 }
  0xe6   :  { %346 = vxpose.xlu1.b32.cont [11/16] %v1041_v20, 128 }
  0xee   :  { %347 = vxpose.xlu1.b32.cont [12/16] %v1027_v55, 128 }
  0xf6   :  { %348 = vxpose.xlu1.b32.cont [13/16] %v1048_v43, 128 }
  0xfe   :  { %349 = vxpose.xlu1.b32.cont [14/16] %v1058_v24, 128 }
 0x106   :  { %350 = vxpose.xlu1.b32.cont [15/16] %v1061_v29, 128 }
 0x10e   :  { %351 = vxpose.xlu1.b32.end [16/16] %v1066_v38, 128 }
 0x13a   :  { %v352_v25 = vpop.trf.xlu1 }
 0x13b   :  { %384 = vmatmul.f32.vlgmr.msra.gmra.mxu0 %v352_v25 }
 0x142   :  { %v353_v26 = vpop.trf.xlu1 }
 0x143   :  { %387 = vmatmul.f32.gmra.mxu0 %v353_v26 }
 0x14a   :  { %v354_v30 = vpop.trf.xlu1 }
 0x14b   :  { %390 = vmatmul.f32.gmra.mxu0 %v354_v30 }
 0x152   :  { %v355_v28 = vpop.trf.xlu1 }
 0x153   :  { %393 = vmatmul.f32.gmra.mxu0 %v355_v28 }
 0x15a   :  { %v356_v33 = vpop.trf.xlu1 }
 0x15b   :  { %396 = vmatmul.f32.vlgmr.msra.gmra.mxu1 %v356_v33 }
 0x162   :  { %v357_v36 = vpop.trf.xlu1 }
 0x163   :  { %399 = vmatmul.f32.gmra.mxu1 %v357_v36 }
 0x16a   :  { %v358_v56 = vpop.trf.xlu1 }
 0x16b   :  { %402 = vmatmul.f32.gmra.mxu1 %v358_v56 }
 0x172   :  { %v359_v59 = vpop.trf.xlu1 }
 0x173   :  { %405 = vmatmul.f32.gmra.mxu1 %v359_v59 }
 0x17a   :  { %v360_v2 = vpop.trf.xlu1 }
 0x17b   :  { %408 = vmatmul.f32.vlgmr.msra.gmra.mxu2 %v360_v2 }
 0x182   :  { %v361_v37 = vpop.trf.xlu1 }
 0x183   :  { %411 = vmatmul.f32.gmra.mxu2 %v361_v37 }
 0x18a   :  { %v362_v51 = vpop.trf.xlu1 }
 0x18b   :  { %414 = vmatmul.f32.gmra.mxu2 %v362_v51 }
 0x192   :  { %v363_v52 = vpop.trf.xlu1 }
 0x193   :  { %417 = vmatmul.f32.gmra.mxu2 %v363_v52 }
 0x19a   :  { %v364_v41 = vpop.trf.xlu1 }
 0x19b   :  { %420 = vmatmul.f32.vlgmr.msra.gmra.mxu3 %v364_v41 }
 0x1a2   :  { %v365_v53 = vpop.trf.xlu1 }
 0x1a3   :  { %423 = vmatmul.f32.gmra.mxu3 %v365_v53 }
 0x1aa   :  { %v366_v42 = vpop.trf.xlu1 }
 0x1ab   :  { %426 = vmatmul.f32.gmra.mxu3 %v366_v42 }
 0x1b2   :  { %v367_v57 = vpop.trf.xlu1 }
 0x1b3   :  { %429 = vmatmul.f32.gmra.mxu3 %v367_v57 }
 0x1b8   :  { %v385_v58 = vpop.f32.mrf.mxu0 }
 0x1b9   :  { %449 = vst [vmem:[#allocation6] sm:$0xff] %v385_v58 }
 0x1c0   :  { %v388_v45 = vpop.f32.mrf.mxu0 }
 0x1c1   :  { %450 = vst [vmem:[#allocation6 + $0x8] sm:$0xff] %v388_v45 }
 0x1c8   :  { %v391_v60 = vpop.f32.mrf.mxu0 }
 0x1c9   :  { %451 = vst [vmem:[#allocation6 + $0x10] sm:$0xff] %v391_v60 }
 0x1d0   :  { %v394_v61 = vpop.f32.mrf.mxu0 }
 0x1d1   :  { %452 = vst [vmem:[#allocation6 + $0x18] sm:$0xff] %v394_v61 }
 0x1d8   :  { %v397_v46 = vpop.f32.mrf.mxu1 }
 0x1d9   :  { %453 = vst [vmem:[#allocation6 + $0x20] sm:$0xff] %v397_v46 }
 0x1e0   :  { %v400_v63 = vpop.f32.mrf.mxu1 }
 0x1e1   :  { %454 = vst [vmem:[#allocation6 + $0x28] sm:$0xff] %v400_v63 }
 0x1e8   :  { %v403_v7 = vpop.f32.mrf.mxu1 }
 0x1e9   :  { %455 = vst [vmem:[#allocation6 + $0x30] sm:$0xff] %v403_v7 }
 0x1f0   :  { %v406_v3 = vpop.f32.mrf.mxu1 }
 0x1f1   :  { %456 = vst [vmem:[#allocation6 + $0x38] sm:$0xff] %v406_v3 }
 0x1fe   :  { %v409_v5 = vpop.f32.mrf.mxu2 }
 0x1ff   :  { %457 = vst [vmem:[#allocation6 + $0x40] sm:$0xff] %v409_v5 }
 0x206   :  { %v412_v13 = vpop.f32.mrf.mxu2 }
 0x207   :  { %458 = vst [vmem:[#allocation6 + $0x48] sm:$0xff] %v412_v13 }
 0x20e   :  { %v415_v14 = vpop.f32.mrf.mxu2 }
 0x20f   :  { %459 = vst [vmem:[#allocation6 + $0x50] sm:$0xff] %v415_v14 }
 0x216   :  { %v418_v6 = vpop.f32.mrf.mxu2 }
 0x217   :  { %460 = vst [vmem:[#allocation6 + $0x58] sm:$0xff] %v418_v6 }
 0x21e   :  { %v421_v9 = vpop.f32.mrf.mxu3 }
 0x21f   :  { %461 = vst [vmem:[#allocation6 + $0x60] sm:$0xff] %v421_v9 }
 0x226   :  { %v424_v10 = vpop.f32.mrf.mxu3 }
 0x227   :  { %462 = vst [vmem:[#allocation6 + $0x68] sm:$0xff] %v424_v10 }
 0x22e   :  { %v427_v11 = vpop.f32.mrf.mxu3 }
 0x22f   :  { %463 = vst [vmem:[#allocation6 + $0x70] sm:$0xff] %v427_v11 }
 0x236   :  { %v430_v8 = vpop.f32.mrf.mxu3 }
 0x237   :  { %464 = vst [vmem:[#allocation6 + $0x78] sm:$0xff] %v430_v8 }
 0x238   :  { %490 = dma.vmem_to_hbm [thread:$0]  %s483_s20, 2048, %s485_s23, [#allocation7], %s667_s14, %s667_s14, %s668_s15  }
 0x239   :  { %662 = dma.done.wait [#allocation4], 2048  }
 0x23a   :  { %663 = vsyncadd [#allocation4], 4294965248 }
 0x23b   :  { %664 = dma.done.wait [#allocation7], 2048  }
 0x23c   :  { %665 = vsyncadd [#allocation7], 4294965248 }
 0x23d   :  { %499 = vsyncpa [#allocation3], 1 }
 0x23e   :  { %500 = vsyncpa [#allocation4], 1 }
 0x23f   :  { %501 = vsyncpa [#allocation7], 1 }

</bundles_post_ra>
